<compile_context>
chip_gen: v6e
topology: v6e:2x2x1
jax: 0.10.0
libtpu: 0.0.40
codegen_flags: <defaults>
</compile_context>

<pallas_src>
import functools

import jax
import jax.numpy as jnp
from jax.experimental import pallas as pl
from jax.experimental.pallas import tpu as pltpu


def _round_up(x, m):
    return (x + m - 1) // m * m


def ac_kernel(act_dim, x_ref, w1_ref, b1_ref, w2_ref, b2_ref,
              wh_ref, bh_ref, out_ref):
    cdt = w1_ref.dtype                       # bf16 compute dtype
    x = x_ref[...].astype(cdt)               # f32 -> bf16 cast inside kernel

    # share_model: two Linear+ReLU layers (bf16 MXU matmuls, f32 accumulate)
    h1 = jnp.dot(x, w1_ref[...], preferred_element_type=jnp.float32) + b1_ref[...]
    h1 = jnp.maximum(h1, 0.0)
    h2 = jnp.dot(h1.astype(cdt), w2_ref[...],
                 preferred_element_type=jnp.float32) + b2_ref[...]
    h2 = jnp.maximum(h2, 0.0)

    # fused heads: one matmul producing [logits(act_dim) | value(1) | pad]
    # (pad lanes already carry a -1e30 bias folded in pack_params).
    head = jnp.dot(h2.astype(cdt), wh_ref[...],
                   preferred_element_type=jnp.float32) + bh_ref[...]

    # only a (1, HEAD_P) mask is needed: exclude the value lane from softmax.
    lane = jax.lax.broadcasted_iota(jnp.int32, (1, head.shape[-1]), 1)
    vmask = lane == act_dim

    masked = jnp.where(vmask, -jnp.inf, head)
    m = jnp.max(masked, axis=-1, keepdims=True)
    e = jnp.exp(masked - m)                  # value/pad lanes -> 0
    denom = jnp.sum(e, axis=-1, keepdims=True)
    probs = e * pl.reciprocal(denom, approx=False)   # exact: probs sum to 1

    # lane-dense packed bf16 output: probs in [0, act_dim), raw value at act_dim
    out_ref[...] = (probs + jnp.where(vmask, head, 0.0)).astype(out_ref.dtype)


def pack_params(params, dtype=jnp.bfloat16):
    """Fuse heads, pad feature dims to 128 lanes, fold pad-lane mask into bias."""
    w1, b1, w2, b2, wa, ba, wv, bv = params
    obs_dim, hidden = w1.shape
    act_dim = wa.shape[1]

    HID_P = _round_up(hidden, 128)
    HEAD_P = _round_up(act_dim + 1, 128)

    def pad2(a, r, c, value=0.0):
        return jnp.pad(a, ((0, r - a.shape[0]), (0, c - a.shape[1])),
                       constant_values=value)

    w_heads = jnp.concatenate([wa, wv], axis=1)      # [hidden, act_dim + 1]
    b_heads = jnp.concatenate([ba, bv], axis=1)      # [1, act_dim + 1]

    packed = (
        pad2(w1, obs_dim, HID_P).astype(dtype),      # K stays = obs_dim (unpadded)
        pad2(b1, 1, HID_P).astype(jnp.float32),
        pad2(w2, HID_P, HID_P).astype(dtype),
        pad2(b2, 1, HID_P).astype(jnp.float32),
        pad2(w_heads, HID_P, HEAD_P).astype(dtype),
        # lanes past the value lane get -1e30: softmax kills them with no
        # in-kernel full-tile mask.
        pad2(b_heads, 1, HEAD_P, value=-1e30).astype(jnp.float32),
    )
    return packed, act_dim


def _choose_tiling(B, tile_b, min_tile=128):
    """Near-equal batch tiles, multiple of 8, >=2-4 steps when rows allow."""
    b8 = _round_up(B, 8)
    nsteps = pl.cdiv(b8, tile_b)                       # cap tile size
    # prefer >=4 (at least 2) steps for v7x megacore sharding / pipelining,
    # but never shrink a tile below ~min_tile rows just to split.
    nsteps = max(nsteps, min(4, max(1, b8 // min_tile)))
    tile = _round_up(pl.cdiv(b8, nsteps), 8)
    nsteps = pl.cdiv(b8, tile)
    return nsteps * tile, tile, nsteps


def ac_model_forward(x, packed_params, act_dim, *, tile_b=2048):
    """Fused actor-critic forward. x: [B, obs_dim] f32 -> (probs, value) f32."""
    w1, b1, w2, b2, wh, bh = packed_params
    B, obs_dim = x.shape
    assert w1.shape[0] == obs_dim
    HID_P = w1.shape[1]
    HEAD_P = wh.shape[1]

    B_pad, TILE_B, nsteps = _choose_tiling(B, tile_b)
    if B_pad != B:
        # rows only — no lane padding, no dtype cast (those happen in-kernel)
        x = jnp.pad(x, ((0, B_pad - B), (0, 0)))

    resident = lambda i: (0, 0)        # weights/biases stay in VMEM across steps

    out = pl.pallas_call(
        functools.partial(ac_kernel, act_dim),
        out_shape=jax.ShapeDtypeStruct((B_pad, HEAD_P), jnp.bfloat16),
        grid=(nsteps,),
        in_specs=[
            # raw f32 x tile; last block dim == full array dim (obs_dim)
            pl.BlockSpec((TILE_B, obs_dim), lambda i: (i, 0)),
            pl.BlockSpec((obs_dim, HID_P), resident),
            pl.BlockSpec((1, HID_P), resident),
            pl.BlockSpec((HID_P, HID_P), resident),
            pl.BlockSpec((1, HID_P), resident),
            pl.BlockSpec((HID_P, HEAD_P), resident),
            pl.BlockSpec((1, HEAD_P), resident),
        ],
        out_specs=pl.BlockSpec((TILE_B, HEAD_P), lambda i: (i, 0)),
        compiler_params=pltpu.CompilerParams(
            dimension_semantics=("parallel",),   # megacore-shard batch on v7x
            vmem_limit_bytes=32 * 1024 * 1024,   # ample for TILE_B<=2048 (~8 MiB used)
        ),
    )(x, w1, b1, w2, b2, wh, bh)

    # unpack tiny slices and return f32 (kernel HBM stream stays bf16)
    action = out[:B, :act_dim].astype(jnp.float32)
    value = out[:B, act_dim:act_dim + 1].astype(jnp.float32)
    return action, value


def init_params(key, obs_dim, hidden, act_dim):
    ks = jax.random.split(key, 8)
    scale = 0.1

    def lin(kw, kb, d_in, d_out):
        w = scale * jax.random.normal(kw, (d_in, d_out), jnp.float32)
        b = scale * jax.random.normal(kb, (1, d_out), jnp.float32)
        return w, b

    w1, b1 = lin(ks[0], ks[1], obs_dim, hidden)
    w2, b2 = lin(ks[2], ks[3], hidden, hidden)
    wa, ba = lin(ks[4], ks[5], hidden, act_dim)
    wv, bv = lin(ks[6], ks[7], hidden, 1)
    return (w1, b1, w2, b2, wa, ba, wv, bv)


def reference_forward(x, params):
    w1, b1, w2, b2, wa, ba, wv, bv = params
    h1 = jnp.maximum(x @ w1 + b1, 0.0)
    h2 = jnp.maximum(h1 @ w2 + b2, 0.0)
    logits = h2 @ wa + ba
    action = jax.nn.softmax(logits, axis=-1)
    value = h2 @ wv + bv
    return action, value


if __name__ == "__main__":
    key = jax.random.PRNGKey(0)
    k_x, k_p = jax.random.split(key)

    B, obs_dim, hidden, act_dim = 8, 32, 64, 8
    x = jax.random.normal(k_x, (B, obs_dim), jnp.float32)
    params = init_params(k_p, obs_dim, hidden, act_dim)

    packed, act_dim = pack_params(params, dtype=jnp.bfloat16)
    action, value = ac_model_forward(x, packed, act_dim)
    jax.block_until_ready((action, value))

    # sanity check against pure-JAX f32 reference (bf16 weights + bf16 packed
    # output => loosened tolerance; see review's correctness note)
    ref_action, ref_value = reference_forward(x, params)
    assert action.shape == (B, act_dim) and value.shape == (B, 1)
    assert jnp.allclose(action, ref_action, atol=3e-2, rtol=3e-2)
    assert jnp.allclose(value, ref_value, atol=3e-2, rtol=3e-2)
    assert jnp.allclose(jnp.sum(action, axis=-1), 1.0, atol=1e-2)

    print("KERNEL_OK")
</pallas_src>

<mosaic_0001>
module attributes {stable_mosaic.version = 11 : i64} {
  func.func @ac_kernel(%arg0: i32, %arg1: memref<8x32xf32, #tpu.memory_space<vmem>>, %arg2: memref<32x128xbf16, #tpu.memory_space<vmem>>, %arg3: memref<1x128xf32, #tpu.memory_space<vmem>>, %arg4: memref<128x128xbf16, #tpu.memory_space<vmem>>, %arg5: memref<1x128xf32, #tpu.memory_space<vmem>>, %arg6: memref<128x128xbf16, #tpu.memory_space<vmem>>, %arg7: memref<1x128xf32, #tpu.memory_space<vmem>>, %arg8: memref<8x128xbf16, #tpu.memory_space<vmem>>) attributes {dimension_semantics = [#tpu.dimension_semantics<parallel>], iteration_bounds = array<i64: 1>, scalar_prefetch = 0 : i64, scratch_operands = 0 : i64, tpu.core_type = #tpu.core_type<tc>, window_params = [{transform_indices = @transform_0, window_bounds = array<i64: 8, 32>}, {pipeline_mode = #tpu.pipeline_mode<synchronous>, transform_indices = @transform_1, window_bounds = array<i64: 32, 128>}, {pipeline_mode = #tpu.pipeline_mode<synchronous>, transform_indices = @transform_2, window_bounds = array<i64: 1, 128>}, {pipeline_mode = #tpu.pipeline_mode<synchronous>, transform_indices = @transform_3, window_bounds = array<i64: 128, 128>}, {pipeline_mode = #tpu.pipeline_mode<synchronous>, transform_indices = @transform_4, window_bounds = array<i64: 1, 128>}, {pipeline_mode = #tpu.pipeline_mode<synchronous>, transform_indices = @transform_5, window_bounds = array<i64: 128, 128>}, {pipeline_mode = #tpu.pipeline_mode<synchronous>, transform_indices = @transform_6, window_bounds = array<i64: 1, 128>}, {transform_indices = @transform_7, window_bounds = array<i64: 8, 128>}]} {
    %c0 = arith.constant 0 : index
    %c0_0 = arith.constant 0 : index
    %0 = vector.load %arg1[%c0, %c0_0] : memref<8x32xf32, #tpu.memory_space<vmem>>, vector<8x32xf32>
    %1 = arith.truncf %0 : vector<8x32xf32> to vector<8x32xbf16>
    %c0_1 = arith.constant 0 : index
    %c0_2 = arith.constant 0 : index
    %2 = vector.load %arg2[%c0_1, %c0_2] : memref<32x128xbf16, #tpu.memory_space<vmem>>, vector<32x128xbf16>
    %cst = arith.constant dense<0.000000e+00> : vector<8x128xf32>
    %3 = tpu.matmul %1, %2, %cst {dimension_numbers = #tpu.dot_dimension_numbers<[1], [0], [0], [1], [0, 0, 1, 1], [], []>} : vector<8x32xbf16>, vector<32x128xbf16>, vector<8x128xf32> -> vector<8x128xf32>
    %c0_3 = arith.constant 0 : index
    %c0_4 = arith.constant 0 : index
    %4 = vector.load %arg3[%c0_3, %c0_4] : memref<1x128xf32, #tpu.memory_space<vmem>>, vector<1x128xf32>
    %5 = vector.broadcast %4 : vector<1x128xf32> to vector<8x128xf32>
    %6 = arith.addf %3, %5 : vector<8x128xf32>
    %cst_5 = arith.constant 0.000000e+00 : f32
    %7 = vector.broadcast %cst_5 : f32 to vector<8x128xf32>
    %8 = arith.maximumf %6, %7 : vector<8x128xf32>
    %9 = arith.truncf %8 : vector<8x128xf32> to vector<8x128xbf16>
    %c0_6 = arith.constant 0 : index
    %c0_7 = arith.constant 0 : index
    %10 = vector.load %arg4[%c0_6, %c0_7] : memref<128x128xbf16, #tpu.memory_space<vmem>>, vector<128x128xbf16>
    %cst_8 = arith.constant dense<0.000000e+00> : vector<8x128xf32>
    %11 = tpu.matmul %9, %10, %cst_8 {dimension_numbers = #tpu.dot_dimension_numbers<[1], [0], [0], [1], [0, 0, 1, 1], [], []>} : vector<8x128xbf16>, vector<128x128xbf16>, vector<8x128xf32> -> vector<8x128xf32>
    %c0_9 = arith.constant 0 : index
    %c0_10 = arith.constant 0 : index
    %12 = vector.load %arg5[%c0_9, %c0_10] : memref<1x128xf32, #tpu.memory_space<vmem>>, vector<1x128xf32>
    %13 = vector.broadcast %12 : vector<1x128xf32> to vector<8x128xf32>
    %14 = arith.addf %11, %13 : vector<8x128xf32>
    %cst_11 = arith.constant 0.000000e+00 : f32
    %15 = vector.broadcast %cst_11 : f32 to vector<8x128xf32>
    %16 = arith.maximumf %14, %15 : vector<8x128xf32>
    %17 = arith.truncf %16 : vector<8x128xf32> to vector<8x128xbf16>
    %c0_12 = arith.constant 0 : index
    %c0_13 = arith.constant 0 : index
    %18 = vector.load %arg6[%c0_12, %c0_13] : memref<128x128xbf16, #tpu.memory_space<vmem>>, vector<128x128xbf16>
    %cst_14 = arith.constant dense<0.000000e+00> : vector<8x128xf32>
    %19 = tpu.matmul %17, %18, %cst_14 {dimension_numbers = #tpu.dot_dimension_numbers<[1], [0], [0], [1], [0, 0, 1, 1], [], []>} : vector<8x128xbf16>, vector<128x128xbf16>, vector<8x128xf32> -> vector<8x128xf32>
    %c0_15 = arith.constant 0 : index
    %c0_16 = arith.constant 0 : index
    %20 = vector.load %arg7[%c0_15, %c0_16] : memref<1x128xf32, #tpu.memory_space<vmem>>, vector<1x128xf32>
    %21 = vector.broadcast %20 : vector<1x128xf32> to vector<8x128xf32>
    %22 = arith.addf %19, %21 : vector<8x128xf32>
    %23 = tpu.iota {dimensions = array<i32: 1>} : vector<1x128xi32>
    %c8_i32 = arith.constant 8 : i32
    %24 = vector.broadcast %c8_i32 : i32 to vector<1x128xi32>
    %25 = arith.cmpi eq, %23, %24 : vector<1x128xi32>
    %cst_17 = arith.constant 0xFF800000 : f32
    %26 = vector.shape_cast %25 : vector<1x128xi1> to vector<1x128xi1>
    %27 = vector.broadcast %26 : vector<1x128xi1> to vector<8x128xi1>
    %28 = vector.broadcast %cst_17 : f32 to vector<8x128xf32>
    %29 = arith.select %27, %28, %22 : vector<8x128xi1>, vector<8x128xf32>
    %cst_18 = arith.constant dense<0xFF800000> : vector<8xf32>
    %30 = vector.multi_reduction <maximumf>, %29, %cst_18 [1] : vector<8x128xf32> to vector<8xf32>
    %31 = vector.shape_cast %30 : vector<8xf32> to vector<8x1xf32>
    %32 = vector.broadcast %31 : vector<8x1xf32> to vector<8x128xf32>
    %33 = arith.subf %29, %32 : vector<8x128xf32>
    %34 = math.exp %33 : vector<8x128xf32>
    %cst_19 = arith.constant dense<0.000000e+00> : vector<8xf32>
    %35 = vector.multi_reduction <add>, %34, %cst_19 [1] : vector<8x128xf32> to vector<8xf32>
    %36 = vector.shape_cast %35 : vector<8xf32> to vector<8x1xf32>
    %37 = tpu.reciprocal %36 : vector<8x1xf32> -> vector<8x1xf32>
    %38 = vector.broadcast %37 : vector<8x1xf32> to vector<8x128xf32>
    %39 = arith.mulf %34, %38 : vector<8x128xf32>
    %cst_20 = arith.constant 0.000000e+00 : f32
    %40 = vector.shape_cast %25 : vector<1x128xi1> to vector<1x128xi1>
    %41 = vector.broadcast %40 : vector<1x128xi1> to vector<8x128xi1>
    %42 = vector.broadcast %cst_20 : f32 to vector<8x128xf32>
    %43 = arith.select %41, %22, %42 : vector<8x128xi1>, vector<8x128xf32>
    %44 = arith.addf %39, %43 : vector<8x128xf32>
    %45 = arith.truncf %44 : vector<8x128xf32> to vector<8x128xbf16>
    %c0_21 = arith.constant 0 : index
    %c0_22 = arith.constant 0 : index
    %46 = vector.load %arg8[%c0_21, %c0_22] : memref<8x128xbf16, #tpu.memory_space<vmem>>, vector<8x128xbf16>
    tpu.vector_store %arg8[%c0_21, %c0_22], %45 {strides = array<i32>} : memref<8x128xbf16, #tpu.memory_space<vmem>>, vector<8x128xbf16>,
    return
  }
  func.func @transform_0(%arg0: i32) -> (i32, i32) {
    %c0_i32 = arith.constant 0 : i32
    %c0_i32_0 = arith.constant 0 : i32
    return %arg0, %c0_i32 : i32, i32
  }
  func.func @transform_1(%arg0: i32) -> (i32, i32) {
    %c0_i32 = arith.constant 0 : i32
    %c0_i32_0 = arith.constant 0 : i32
    %c0_i32_1 = arith.constant 0 : i32
    return %c0_i32, %c0_i32_0 : i32, i32
  }
  func.func @transform_2(%arg0: i32) -> (i32, i32) {
    %c0_i32 = arith.constant 0 : i32
    %c0_i32_0 = arith.constant 0 : i32
    %c0_i32_1 = arith.constant 0 : i32
    return %c0_i32, %c0_i32_0 : i32, i32
  }
  func.func @transform_3(%arg0: i32) -> (i32, i32) {
    %c0_i32 = arith.constant 0 : i32
    %c0_i32_0 = arith.constant 0 : i32
    %c0_i32_1 = arith.constant 0 : i32
    return %c0_i32, %c0_i32_0 : i32, i32
  }
  func.func @transform_4(%arg0: i32) -> (i32, i32) {
    %c0_i32 = arith.constant 0 : i32
    %c0_i32_0 = arith.constant 0 : i32
    %c0_i32_1 = arith.constant 0 : i32
    return %c0_i32, %c0_i32_0 : i32, i32
  }
  func.func @transform_5(%arg0: i32) -> (i32, i32) {
    %c0_i32 = arith.constant 0 : i32
    %c0_i32_0 = arith.constant 0 : i32
    %c0_i32_1 = arith.constant 0 : i32
    return %c0_i32, %c0_i32_0 : i32, i32
  }
  func.func @transform_6(%arg0: i32) -> (i32, i32) {
    %c0_i32 = arith.constant 0 : i32
    %c0_i32_0 = arith.constant 0 : i32
    %c0_i32_1 = arith.constant 0 : i32
    return %c0_i32, %c0_i32_0 : i32, i32
  }
  func.func @transform_7(%arg0: i32) -> (i32, i32) {
    %c0_i32 = arith.constant 0 : i32
    %c0_i32_0 = arith.constant 0 : i32
    return %arg0, %c0_i32 : i32, i32
  }
}

</mosaic_0001>

<bundles_post_ra>
// kernel: tpu_custom_call.1
= control target key start
LH: loop header
LB: loop body
LE: loop exit
PB: predicated region body
PF: predicated region fallthrough
CT: control target
= control target key end

     0   :  { %12 = vsyncpa [#allocation3], 0  ;;  %s748_s0 = inlined_call_operand.hbm [shape: f32[8,32], index: 0, kind: input, shape index: {}]   ;;  %s749_s1 = inlined_call_operand.hbm [shape: bf16[32,128], index: 1, kind: input, shape index: {}]   ;;  %s750_s2 = inlined_call_operand.vmem [shape: f32[1,128], index: 2, kind: input, shape index: {}]   ;;  %s751_s3 = inlined_call_operand.hbm [shape: bf16[128,128], index: 3, kind: input, shape index: {}]   ;;  %s752_s4 = inlined_call_operand.vmem [shape: f32[1,128], index: 4, kind: input, shape index: {}]   ;;  %s753_s5 = inlined_call_operand.hbm [shape: bf16[128,128], index: 5, kind: input, shape index: {}]   ;;  %s754_s6 = inlined_call_operand.vmem [shape: f32[1,128], index: 6, kind: input, shape index: {}]   ;;  %s755_s7 = inlined_call_operand.hbm [shape: bf16[8,128], index: 7, kind: output, shape index: {}]  }
   0x1   :  { %13 = vsyncpa [#allocation6], 0 }
   0x2   :  { %14 = vsyncpa [#allocation9], 0 }
   0x3   :  { %15 = vsyncpa [#allocation4], 0  ;;  %s642_s24 = smov [#allocation5]  }
   0x4   :  { %s31_s25 = sshll.u32 %s642_s24, 4  ;;  %s32_s25 = int_to_ptr.vmem [resolvable:$true] %s31_s25 }
   0x5   :  { %s542_s26 = scalar_lea.vmem %s32_s25, 256  ;;  %p547_p1 = scmp.lt.s32.totalorder %s32_s25, %s32_s25 }
   0x6   :  { %p543_p0 = scmp.ne.s32.totalorder %s32_s25, %s542_s26  ;;  %p548_p2 = scmp.lt.s32.totalorder %s542_s26, %s542_s26 }
   0x8   :  { %p549_p3 = por %p548_p2, %p547_p1 }
   0xa   :  { %p550_p4 = pnand %p549_p3, %p543_p0 }
   0xc   :  { %553 = shalt.err (!%p550_p4)
}
   0xd   :  { %s643_s27 = smov 64   ;;  %s644_s28 = smov 4  }
   0xe   :  { %37 = dma.hbm_to_vmem [thread:$0]  %s749_s1, 256, %s32_s25, [#allocation6], %s643_s27, %s643_s27, %s644_s28  }
   0xf   :  { %s645_s8 = smov [#allocation2]   ;;  %s646_s10 = smov [#allocation7]  }
  0x10   :  { %s22_s9 = sshll.u32 %s645_s8, 4  ;;  %s45_s11 = sshll.u32 %s646_s10, 4  ;;  %s23_s9 = int_to_ptr.vmem [resolvable:$true] %s22_s9  ;;  %s46_s11 = int_to_ptr.vmem [resolvable:$true] %s45_s11 }
  0x11   :  { %s562_s12 = scalar_lea.vmem %s23_s9, 128  ;;  %p567_p6 = scmp.lt.s32.totalorder %s23_s9, %s23_s9 }
  0x12   :  { %p563_p5 = scmp.ne.s32.totalorder %s23_s9, %s562_s12  ;;  %p568_p7 = scmp.lt.s32.totalorder %s562_s12, %s562_s12 }
  0x14   :  { %p569_p8 = por %p568_p7, %p567_p6 }
  0x16   :  { %p570_p9 = pnand %p569_p8, %p563_p5 }
  0x18   :  { %573 = shalt.err (!%p570_p9)
}
  0x19   :  { %25 = dma.hbm_to_vmem [thread:$0]  %s748_s0, 128, %s23_s9, [#allocation3]  }
  0x1a   :  { %s582_s15 = scalar_lea.vmem %s46_s11, 1024  ;;  %p587_p11 = scmp.lt.s32.totalorder %s46_s11, %s46_s11 }
  0x1b   :  { %p583_p10 = scmp.ne.s32.totalorder %s46_s11, %s582_s15  ;;  %p588_p12 = scmp.lt.s32.totalorder %s582_s15, %s582_s15 }
  0x1d   :  { %p589_p13 = por %p588_p12, %p587_p11 }
  0x1f   :  { %p590_p0 = pnand %p589_p13, %p583_p10 }
  0x21   :  { %593 = shalt.err (!%p590_p0)
}
  0x22   :  { %51 = dma.hbm_to_vmem [thread:$0]  %s751_s3, 1024, %s46_s11, [#allocation6], %s643_s27, %s643_s27, %s644_s28  }
  0x23   :  { %s647_s17 = smov [#allocation8]  }
  0x24   :  { %s59_s18 = sshll.u32 %s647_s17, 4  ;;  %s60_s18 = int_to_ptr.vmem [resolvable:$true] %s59_s18 }
  0x25   :  { %s602_s19 = scalar_lea.vmem %s60_s18, 1024  ;;  %p607_p2 = scmp.lt.s32.totalorder %s60_s18, %s60_s18 }
  0x26   :  { %p603_p1 = scmp.ne.s32.totalorder %s60_s18, %s602_s19  ;;  %p608_p3 = scmp.lt.s32.totalorder %s602_s19, %s602_s19 }
  0x28   :  { %p609_p4 = por %p608_p3, %p607_p2 }
  0x2a   :  { %p610_p5 = pnand %p609_p4, %p603_p1 }
  0x2c   :  { %613 = shalt.err (!%p610_p5)
}
  0x2d   :  { %65 = dma.hbm_to_vmem [thread:$0]  %s753_s5, 1024, %s60_s18, [#allocation9], %s643_s27, %s643_s27, %s644_s28  }
  0x2e   :  { %634 = dma.done.wait [#allocation3], 128  }
  0x2f   :  { %635 = vsyncadd [#allocation3], 4294967168 }
  0x30   :  { %636 = dma.done.wait [#allocation6], 1280  }
  0x31   :  { %637 = vsyncadd [#allocation6], 4294966016 }
  0x32   :  { %638 = dma.done.wait [#allocation9], 1024  }
  0x33   :  { %639 = vsyncadd [#allocation9], 4294966272  ;;  %v648_v0 = vmov 0.0   ;;  %vm649_vm0 = vmmov 0   ;;  %v512_v1 = vld [vmem:[#allocation5 + $0x8] sm:$0xff]   ;;  %v513_v2 = vld [vmem:[#allocation5] sm:$0xff]   ;;  %v376_v37 = vlaneseq }
  0x34   :  { %455 = vmatprep.subr.bf16.mxu0 %v648_v0  ;;  %459 = vmatprep.mubr.msk.bf16.mxu0 %vm649_vm0, %v648_v0  ;;  %v81_v3 = vld [vmem:[#allocation2] sm:$0xff]  ;;  %v514_v4 = vld [vmem:[#allocation7 + $0x38] sm:$0xff]   ;;  %v515_v6 = vld [vmem:[#allocation7 + $0x30] sm:$0xff]   ;;  %vm106_vm1 = vcmask 261120  }
  0x35   :  { %463 = vmatprep.subr.bf16.mxu1 %v648_v0  ;;  %479 = vmatprep.mubr.msk.bf16.mxu1 %vm649_vm0, %v648_v0  ;;  %v82_v5 = vpack.c.bf16 %v81_v3, %v81_v3  ;;  %v516_v7 = vld [vmem:[#allocation7 + $0x28] sm:$0xff]   ;;  %v517_v8 = vld [vmem:[#allocation7 + $0x20] sm:$0xff]   ;;  %v518_v9 = vld [vmem:[#allocation7 + $0x18] sm:$0xff]   ;;  %v377_v38 = vand.u32 127, %v376_v37 }
  0x36   :  { %456 = vmatpush3.bf16.msra.mxu0 %v512_v1  ;;  %464 = vmatpush3.bf16.msra.mxu1 %v514_v4  ;;  %v519_v10 = vld [vmem:[#allocation7 + $0x10] sm:$0xff]   ;;  %v520_v11 = vld [vmem:[#allocation7 + $0x8] sm:$0xff]   ;;  %v521_v12 = vld [vmem:[#allocation7] sm:$0xff]  }
  0x37   :  { %457 = vmatprep.subr.bf16.mxu0 %v648_v0  ;;  %465 = vmatprep.subr.bf16.mxu1 %v648_v0  ;;  %v522_v13 = vld [vmem:[#allocation8 + $0x38] sm:$0xff]   ;;  %v523_v14 = vld [vmem:[#allocation8 + $0x30] sm:$0xff]   ;;  %v524_v15 = vld [vmem:[#allocation8 + $0x28] sm:$0xff]   ;;  %vm378_vm2 = vcmp.eq.s32.totalorder %v377_v38, 8 }
  0x38   :  { %v525_v16 = vld [vmem:[#allocation8 + $0x20] sm:$0xff]   ;;  %v526_v17 = vld [vmem:[#allocation8 + $0x18] sm:$0xff]   ;;  %v527_v18 = vld [vmem:[#allocation8 + $0x10] sm:$0xff]  }
  0x39   :  { %v412_v19 = vld [vmem:[%s750_s2] ss:$0 sm:$0xff]  ;;  %v529_v28 = vld [vmem:[#allocation8] sm:$0xff]  }
  0x3a   :  { %458 = vmatpush3.bf16.msra.mxu0 %v513_v2  ;;  %466 = vmatpush3.bf16.msra.mxu1 %v515_v6  ;;  %v528_v27 = vld [vmem:[#allocation8 + $0x8] sm:$0xff]  }
  0x3b   :  { %483 = vmatprep.subr.bf16.mxu0 %v648_v0  ;;  %467 = vmatprep.subr.bf16.mxu1 %v648_v0  ;;  %v416_v29 = vld [vmem:[%s752_s4] ss:$0 sm:$0xff]  ;;  %s650_s4 = smov [#allocation10]  }
  0x3c   :  { %v425_v39 = vld [vmem:[%s754_s6] ss:$0 sm:$0xff]  ;;  %s401_s6 = sshll.u32 %s650_s4, 4  ;;  %s402_s6 = int_to_ptr.vmem [resolvable:$true] %s401_s6 }
  0x3d   :  { %460 = vmatmul.mubr.msk.bf16.vlgmr.msra.gmra.mxu0 %vm106_vm1, %v82_v5  ;;  %s614_s24 = scalar_lea.vmem %s402_s6, 64  ;;  %p619_p7 = scmp.lt.s32.totalorder %s402_s6, %s402_s6 }
  0x3e   :  { %499 = vmatprep.mubr.msk.bf16.mxu0 %vm649_vm0, %v648_v0  ;;  %468 = vmatpush3.bf16.msra.mxu1 %v516_v7  ;;  %p615_p6 = scmp.ne.s32.totalorder %s402_s6, %s614_s24  ;;  %p620_p8 = scmp.lt.s32.totalorder %s614_s24, %s614_s24 }
  0x3f   :  { %469 = vmatprep.subr.bf16.mxu1 %v648_v0  ;;  %484 = vmatpush3.bf16.msra.mxu0 %v522_v13 }
  0x40   :  { %485 = vmatprep.subr.bf16.mxu0 %v648_v0  ;;  %p621_p9 = por %p620_p8, %p619_p7 }
  0x42   :  { %470 = vmatpush3.bf16.msra.mxu1 %v517_v8  ;;  %p622_p10 = pnand %p621_p9, %p615_p6 }
  0x43   :  { %471 = vmatprep.subr.bf16.mxu1 %v648_v0  ;;  %486 = vmatpush3.bf16.msra.mxu0 %v523_v14 }
  0x44   :  { %487 = vmatprep.subr.bf16.mxu0 %v648_v0 }
  0x46   :  { %472 = vmatpush3.bf16.msra.mxu1 %v518_v9 }
  0x47   :  { %473 = vmatprep.subr.bf16.mxu1 %v648_v0  ;;  %488 = vmatpush3.bf16.msra.mxu0 %v524_v15 }
  0x48   :  { %489 = vmatprep.subr.bf16.mxu0 %v648_v0 }
  0x4a   :  { %474 = vmatpush3.bf16.msra.mxu1 %v519_v10 }
  0x4b   :  { %475 = vmatprep.subr.bf16.mxu1 %v648_v0  ;;  %490 = vmatpush3.bf16.msra.mxu0 %v525_v16 }
  0x4c   :  { %491 = vmatprep.subr.bf16.mxu0 %v648_v0 }
  0x4e   :  { %476 = vmatpush3.bf16.msra.mxu1 %v520_v11 }
  0x4f   :  { %477 = vmatprep.subr.bf16.mxu1 %v648_v0  ;;  %492 = vmatpush3.bf16.msra.mxu0 %v526_v17 }
  0x50   :  { %493 = vmatprep.subr.bf16.mxu0 %v648_v0 }
  0x52   :  { %478 = vmatpush3.bf16.msra.mxu1 %v521_v12 }
  0x53   :  { %494 = vmatpush3.bf16.msra.mxu0 %v527_v18 }
  0x54   :  { %495 = vmatprep.subr.bf16.mxu0 %v648_v0 }
  0x57   :  { %496 = vmatpush3.bf16.msra.mxu0 %v528_v27 }
  0x58   :  { %497 = vmatprep.subr.bf16.mxu0 %v648_v0 }
  0x5b   :  { %498 = vmatpush3.bf16.msra.mxu0 %v529_v28 }
  0xfd   :  { %v144_v20 = vpop.f32.mrf.mxu0 }
  0xfe   :  { %v145_v21 = vadd.f32 %v412_v19, %v144_v20 }
  0xff   :  { %v461_v22 = vpop.f32.mrf.mxu0 }
 0x100   :  { %v150_v23 = vmax.f32 %v145_v21, 0.0 }
 0x101   :  { %v147_v24 = vpop.f32.mrf.mxu0 }
 0x102   :  { %v151_v25 = vpack.c.bf16 %v150_v23, %v150_v23 }
 0x103   :  { %v462_v26 = vpop.f32.mrf.mxu0 }
 0x104   :  { %480 = vmatmul.mubr.bf16.vlgmr.msra.gmra.mxu1 %v151_v25 }
 0x1c4   :  { %v257_v30 = vpop.f32.mrf.mxu1 }
 0x1c5   :  { %v258_v31 = vadd.f32 %v416_v29, %v257_v30 }
 0x1c6   :  { %v481_v32 = vpop.f32.mrf.mxu1 }
 0x1c7   :  { %v263_v33 = vmax.f32 %v258_v31, 0.0 }
 0x1c8   :  { %v260_v34 = vpop.f32.mrf.mxu1 }
 0x1c9   :  { %v264_v35 = vpack.c.bf16 %v263_v33, %v263_v33 }
 0x1ca   :  { %v482_v36 = vpop.f32.mrf.mxu1 }
 0x1cb   :  { %500 = vmatmul.mubr.bf16.vlgmr.msra.gmra.mxu0 %v264_v35 }
 0x28b   :  { %v370_v40 = vpop.f32.mrf.mxu0 }
 0x28c   :  { %v371_v41 = vadd.f32 %v425_v39, %v370_v40 }
 0x28d   :  { %v501_v42 = vpop.f32.mrf.mxu0 }
 0x28e   :  { %v381_v43 = vsel %vm378_vm2, -inf, %v371_v41  ;;  %v391_v44 = vsel %vm378_vm2, %v371_v41, 0.0 }
 0x28f   :  { %382 = vmax.xlane.f32.xlu0 %v381_v43  ;;  %v373_v45 = vpop.f32.mrf.mxu0 }
 0x291   :  { %v502_v46 = vpop.f32.mrf.mxu0 }
 0x318   :  { %v383_v47 = vpop.xlane.xlu0 %382 }
 0x319   :  { %v384_v48 = vsub.f32 %v381_v43, %v383_v47 }
 0x31b   :  { %v385_v49 = vmul.f32 1.442695, %v384_v48 }
 0x31d   :  { %530 = vpow2.f32 %v385_v49 }
 0x32a   :  { %v531_v50 = vpop.eup %530 }
 0x32b   :  { %387 = vadd.xlane.f32.xlu0 %v531_v50 }
 0x3b4   :  { %v388_v51 = vpop.xlane.xlu0 %387 }
 0x3b5   :  { %532 = vrcp.f32 %v388_v51 }
 0x3c2   :  { %v533_v52 = vpop.eup %532 }
 0x3c3   :  { %v390_v53 = vmul.f32 %v533_v52, %v531_v50 }
 0x3c5   :  { %v392_v54 = vadd.f32 %v391_v44, %v390_v53 }
 0x3c7   :  { %v393_v55 = vpack.c.bf16 %v392_v54, %v392_v54 }
 0x3c9   :  { %394 = vst [vmem:[#allocation10] sm:$0xf] %v393_v55 }
 0x3ca   :  { %625 = shalt.err (!%p622_p10)
}
 0x3cb   :  { %404 = dma.vmem_to_hbm [thread:$0]  %s402_s6, 64, %s755_s7, [#allocation4]  }
 0x3cc   :  { %640 = dma.done.wait [#allocation4], 64  }
 0x3cd   :  { %641 = vsyncadd [#allocation4], 4294967232 }
 0x3ce   :  { %408 = vsyncpa [#allocation3], 1 }
 0x3cf   :  { %409 = vsyncpa [#allocation6], 1 }
 0x3d0   :  { %410 = vsyncpa [#allocation9], 1 }
 0x3d1   :  { %411 = vsyncpa [#allocation4], 1 }

</bundles_post_ra>
